<compile_context>
chip_gen: v7x
topology: tpu7x:2x2x1
jax: 0.10.0
libtpu: 0.0.40
codegen_flags: <defaults>
</compile_context>

<pallas_src>
import jax
import jax.numpy as jnp
from jax.experimental import pallas as pl
from jax.experimental.pallas import tpu as pltpu

EPS = 1e-8  # matches F.cosine_similarity default eps


def _loss_kernel(a_ref, p_ref, n_ref, o_ref):
    a = a_ref[...].astype(jnp.float32)
    p = p_ref[...].astype(jnp.float32)
    n = n_ref[...].astype(jnp.float32)

    eps_sq = jnp.float32(EPS * EPS)
    # Anchor squared norm computed once, shared by both similarity branches.
    w_aa = jnp.maximum(jnp.sum(a * a, axis=1, keepdims=True), eps_sq)

    def sq_cos(y):
        w_ay = jnp.sum(a * y, axis=1, keepdims=True)
        w_yy = jnp.maximum(jnp.sum(y * y, axis=1, keepdims=True), eps_sq)
        # cos^2 with per-norm clamp, no sqrt; single reciprocal.
        return (w_ay * w_ay) * pl.reciprocal(w_aa * w_yy, approx=False)

    pos_dist = sq_cos(p)                        # (TN, 1)
    neg_dist = sq_cos(n)                        # (TN, 1)
    o_ref[...] = (pos_dist + (1.0 - neg_dist)) * 0.5


def _round_up(x: int, m: int) -> int:
    return ((x + m - 1) // m) * m


def _vmem_capacity_bytes() -> int:
    """Per-TensorCore VMEM capacity; conservative (v7x-sized) fallback."""
    try:
        return int(pltpu.get_tpu_info().vmem_capacity_bytes)
    except Exception:
        return 64 * 1024 * 1024


def _pick_row_tile(n_rows: int, d: int, itemsize: int, input_budget: int) -> int:
    """Row tile sized against lane-padded VMEM footprint, targeting 1-4 MiB blocks."""
    sublane = max(8, 32 // itemsize)            # 8 for f32, 16 for bf16, 32 for int8
    lane_d = _round_up(d, 128)                  # VMEM blocks are lane-padded to 128
    bytes_per_row = lane_d * itemsize
    # ~4 MiB per input block, but keep 3 inputs x 2 pipeline buffers <= budget.
    per_block_target = max(bytes_per_row * sublane,
                           min(4 * 1024 * 1024, input_budget // 6))
    cap = max(sublane, per_block_target // bytes_per_row)
    # Ensure >= 2 grid steps so the "parallel" row axis can feed both v7x TCs.
    half = _round_up(pl.cdiv(n_rows, 2), sublane)
    cap = min(cap, half, _round_up(n_rows, sublane))
    cap = max(sublane, cap - cap % sublane)
    return int(cap)


def triplet_squared_similarity(anchor, positive, negative, reduction: str = "mean"):
    """Pallas implementation of TripletSquaredSimilarity.forward."""
    assert anchor.shape == positive.shape == negative.shape
    assert anchor.ndim == 2
    assert reduction in ("mean", "sum", "none")
    N, D = anchor.shape
    itemsize = jnp.dtype(anchor.dtype).itemsize

    vmem_cap = _vmem_capacity_bytes()
    # Scoped limit with headroom (48 MiB on v7x's 64 MiB, 96 MiB on 128 MiB chips);
    # half of it is the double-buffered 3-input budget, the rest covers the f32
    # upcast temporaries, output buffers and compiler scratch.
    vmem_limit = max(32 << 20, min((vmem_cap * 3) // 4, vmem_cap - (16 << 20)))
    input_budget = vmem_limit // 2

    row_tile = _pick_row_tile(N, D, itemsize, input_budget)
    n_tiles = pl.cdiv(N, row_tile)

    row_spec = pl.BlockSpec((row_tile, D), lambda i: (i, 0))

    cost = pl.CostEstimate(
        flops=10 * N * D,                              # 5 per-row dot-product passes
        transcendentals=0,
        bytes_accessed=3 * N * D * itemsize + 4 * N,   # 3 inputs + f32 per-row output
    )

    per_row = pl.pallas_call(
        _loss_kernel,
        out_shape=jax.ShapeDtypeStruct((N, 1), jnp.float32),
        grid=(n_tiles,),
        in_specs=[row_spec, row_spec, row_spec],
        out_specs=pl.BlockSpec((row_tile, 1), lambda i: (i, 0)),
        compiler_params=pltpu.CompilerParams(
            dimension_semantics=("parallel",),         # megacore sharding on v7x
            vmem_limit_bytes=int(vmem_limit),
        ),
        cost_estimate=cost,
    )(anchor, positive, negative)

    loss = per_row[:, 0]
    if reduction == "mean":
        return jnp.mean(loss)
    if reduction == "sum":
        return jnp.sum(loss)
    return loss


def _reference(anchor, positive, negative, reduction="mean"):
    """Pure-JAX mirror of the PyTorch module (per-norm eps clamp like torch)."""
    def sq_cos(x, y):
        w12 = jnp.sum(x * y, axis=1)
        n1 = jnp.maximum(jnp.sqrt(jnp.sum(x * x, axis=1)), EPS)
        n2 = jnp.maximum(jnp.sqrt(jnp.sum(y * y, axis=1)), EPS)
        c = w12 / (n1 * n2)
        return c ** 2

    loss = (sq_cos(anchor, positive) + (1.0 - sq_cos(anchor, negative))) / 2.0
    if reduction == "mean":
        return loss.mean()
    if reduction == "sum":
        return loss.sum()
    return loss


if __name__ == "__main__":
    key = jax.random.PRNGKey(0)
    k1, k2, k3 = jax.random.split(key, 3)
    # Small embedding batch; N deliberately NOT a tile multiple to exercise the
    # ragged (un-padded) last block path.
    N, D = 19, 32
    anchor = jax.random.normal(k1, (N, D), dtype=jnp.float32)
    positive = jax.random.normal(k2, (N, D), dtype=jnp.float32)
    negative = jax.random.normal(k3, (N, D), dtype=jnp.float32)

    out_mean = jax.block_until_ready(
        triplet_squared_similarity(anchor, positive, negative, reduction="mean"))
    out_sum = jax.block_until_ready(
        triplet_squared_similarity(anchor, positive, negative, reduction="sum"))
    out_none = jax.block_until_ready(
        triplet_squared_similarity(anchor, positive, negative, reduction="none"))

    ref_mean = _reference(anchor, positive, negative, "mean")
    ref_sum = _reference(anchor, positive, negative, "sum")
    ref_none = _reference(anchor, positive, negative, "none")

    assert out_none.shape == (N,)
    assert jnp.allclose(out_mean, ref_mean, atol=1e-5, rtol=1e-5), (out_mean, ref_mean)
    assert jnp.allclose(out_sum, ref_sum, atol=1e-5, rtol=1e-5), (out_sum, ref_sum)
    assert jnp.allclose(out_none, ref_none, atol=1e-5, rtol=1e-5)
    print("KERNEL_OK")
</pallas_src>

<mosaic_0001>
module attributes {stable_mosaic.version = 11 : i64} {
  func.func @_loss_kernel(%arg0: i32, %arg1: memref<16x32xf32, #tpu.memory_space<vmem>>, %arg2: memref<16x32xf32, #tpu.memory_space<vmem>>, %arg3: memref<16x32xf32, #tpu.memory_space<vmem>>, %arg4: memref<16x1xf32, #tpu.memory_space<vmem>>) attributes {dimension_semantics = [#tpu.dimension_semantics<parallel>], iteration_bounds = array<i64: 2>, scalar_prefetch = 0 : i64, scratch_operands = 0 : i64, tpu.core_type = #tpu.core_type<tc>, window_params = [{transform_indices = @transform_0, window_bounds = array<i64: 16, 32>}, {transform_indices = @transform_1, window_bounds = array<i64: 16, 32>}, {transform_indices = @transform_2, window_bounds = array<i64: 16, 32>}, {transform_indices = @transform_3, window_bounds = array<i64: 16, 1>}]} {
    %c0 = arith.constant 0 : index
    %c0_0 = arith.constant 0 : index
    %0 = vector.load %arg1[%c0, %c0_0] : memref<16x32xf32, #tpu.memory_space<vmem>>, vector<16x32xf32>
    %c0_1 = arith.constant 0 : index
    %c0_2 = arith.constant 0 : index
    %1 = vector.load %arg2[%c0_1, %c0_2] : memref<16x32xf32, #tpu.memory_space<vmem>>, vector<16x32xf32>
    %c0_3 = arith.constant 0 : index
    %c0_4 = arith.constant 0 : index
    %2 = vector.load %arg3[%c0_3, %c0_4] : memref<16x32xf32, #tpu.memory_space<vmem>>, vector<16x32xf32>
    %3 = arith.mulf %0, %0 : vector<16x32xf32>
    %cst = arith.constant dense<0.000000e+00> : vector<16xf32>
    %4 = vector.multi_reduction <add>, %3, %cst [1] : vector<16x32xf32> to vector<16xf32>
    %5 = vector.shape_cast %4 : vector<16xf32> to vector<16x1xf32>
    %cst_5 = arith.constant 1.000000e-16 : f32
    %6 = vector.broadcast %cst_5 : f32 to vector<16x1xf32>
    %7 = arith.maximumf %5, %6 : vector<16x1xf32>
    %8 = arith.mulf %0, %1 : vector<16x32xf32>
    %cst_6 = arith.constant dense<0.000000e+00> : vector<16xf32>
    %9 = vector.multi_reduction <add>, %8, %cst_6 [1] : vector<16x32xf32> to vector<16xf32>
    %10 = vector.shape_cast %9 : vector<16xf32> to vector<16x1xf32>
    %11 = arith.mulf %1, %1 : vector<16x32xf32>
    %cst_7 = arith.constant dense<0.000000e+00> : vector<16xf32>
    %12 = vector.multi_reduction <add>, %11, %cst_7 [1] : vector<16x32xf32> to vector<16xf32>
    %13 = vector.shape_cast %12 : vector<16xf32> to vector<16x1xf32>
    %cst_8 = arith.constant 1.000000e-16 : f32
    %14 = vector.broadcast %cst_8 : f32 to vector<16x1xf32>
    %15 = arith.maximumf %13, %14 : vector<16x1xf32>
    %16 = arith.mulf %10, %10 : vector<16x1xf32>
    %17 = arith.mulf %7, %15 : vector<16x1xf32>
    %18 = tpu.reciprocal %17 : vector<16x1xf32> -> vector<16x1xf32>
    %19 = arith.mulf %16, %18 : vector<16x1xf32>
    %20 = arith.mulf %0, %2 : vector<16x32xf32>
    %cst_9 = arith.constant dense<0.000000e+00> : vector<16xf32>
    %21 = vector.multi_reduction <add>, %20, %cst_9 [1] : vector<16x32xf32> to vector<16xf32>
    %22 = vector.shape_cast %21 : vector<16xf32> to vector<16x1xf32>
    %23 = arith.mulf %2, %2 : vector<16x32xf32>
    %cst_10 = arith.constant dense<0.000000e+00> : vector<16xf32>
    %24 = vector.multi_reduction <add>, %23, %cst_10 [1] : vector<16x32xf32> to vector<16xf32>
    %25 = vector.shape_cast %24 : vector<16xf32> to vector<16x1xf32>
    %cst_11 = arith.constant 1.000000e-16 : f32
    %26 = vector.broadcast %cst_11 : f32 to vector<16x1xf32>
    %27 = arith.maximumf %25, %26 : vector<16x1xf32>
    %28 = arith.mulf %22, %22 : vector<16x1xf32>
    %29 = arith.mulf %7, %27 : vector<16x1xf32>
    %30 = tpu.reciprocal %29 : vector<16x1xf32> -> vector<16x1xf32>
    %31 = arith.mulf %28, %30 : vector<16x1xf32>
    %cst_12 = arith.constant 1.000000e+00 : f32
    %32 = vector.broadcast %cst_12 : f32 to vector<16x1xf32>
    %33 = arith.subf %32, %31 : vector<16x1xf32>
    %34 = arith.addf %19, %33 : vector<16x1xf32>
    %cst_13 = arith.constant 5.000000e-01 : f32
    %35 = vector.broadcast %cst_13 : f32 to vector<16x1xf32>
    %36 = arith.mulf %34, %35 : vector<16x1xf32>
    %c0_14 = arith.constant 0 : index
    %c0_15 = arith.constant 0 : index
    %37 = vector.load %arg4[%c0_14, %c0_15] : memref<16x1xf32, #tpu.memory_space<vmem>>, vector<16x1xf32>
    tpu.vector_store %arg4[%c0_14, %c0_15], %36 {strides = array<i32>} : memref<16x1xf32, #tpu.memory_space<vmem>>, vector<16x1xf32>,
    return
  }
  func.func @transform_0(%arg0: i32) -> (i32, i32) {
    %c0_i32 = arith.constant 0 : i32
    %c0_i32_0 = arith.constant 0 : i32
    return %arg0, %c0_i32 : i32, i32
  }
  func.func @transform_1(%arg0: i32) -> (i32, i32) {
    %c0_i32 = arith.constant 0 : i32
    %c0_i32_0 = arith.constant 0 : i32
    return %arg0, %c0_i32 : i32, i32
  }
  func.func @transform_2(%arg0: i32) -> (i32, i32) {
    %c0_i32 = arith.constant 0 : i32
    %c0_i32_0 = arith.constant 0 : i32
    return %arg0, %c0_i32 : i32, i32
  }
  func.func @transform_3(%arg0: i32) -> (i32, i32) {
    %c0_i32 = arith.constant 0 : i32
    %c0_i32_0 = arith.constant 0 : i32
    return %arg0, %c0_i32 : i32, i32
  }
}

</mosaic_0001>

<bundles_post_ra>
// kernel: tpu_custom_call.1
= control target key start
LH: loop header
LB: loop body
LE: loop exit
PB: predicated region body
PF: predicated region fallthrough
CT: control target
= control target key end

     0   :  { %8 = vsyncpa [#allocation3], 0  ;;  %s1292_s0 = inlined_call_operand.hbm [shape: f32[19,32], index: 0, kind: input, shape index: {}]   ;;  %s1293_s1 = inlined_call_operand.hbm [shape: f32[19,32], index: 1, kind: input, shape index: {}]   ;;  %s1294_s2 = inlined_call_operand.hbm [shape: f32[19,32], index: 2, kind: input, shape index: {}]   ;;  %s1295_s3 = inlined_call_operand.vmem [shape: f32[19,1], index: 3, kind: output, shape index: {}]  }
   0x1   :  { %10 = vsyncpa [#allocation3 + $0x1], 0 }
   0x2   :  { %11 = vsyncpa [#allocation5], 0 }
   0x3   :  { %13 = vsyncpa [#allocation5 + $0x1], 0  ;;  %s1033_s12 = smov 0   ;;  %s1035_s13 = smov 0  }
   0x4   :  { %s1037_s14 = smov 0   ;;  %s1039_s15 = smov 0  }
   0x5 LB: > { %s1052_s16 = sadd.s32 4294967295, %s970_s15   ;;  %s1055_s17 = sadd.s32 1, %s970_s15   ;;  %s970_s15 = sphi %s1039_s15, %s1303_s15   ;;  %s966_s14 = sphi %s1037_s14, %s1302_s14   ;;  %s962_s13 = sphi %s1035_s13, %s1301_s13   ;;  %s958_s12 = sphi %s1033_s12, %s1300_s12  }
   0x6   : > { %s23_s18 = ssub.s32 %s970_s15, %s1055_s17  ;;  %s26_s19 = sadd.s32 1, %s966_s14 }
   0x7   : > { %p24_p0 = scmp.eq.s32.totalorder %s23_s18, 0  ;;  %p33_p1 = scmp.ne.s32.totalorder %s966_s14, %s962_s13 }
   0x8   : > { %p34_p2 = scmp.eq.s32.totalorder %s970_s15, 0  ;;  %p39_p3 = scmp.ne.s32.totalorder %s962_s13, %s958_s12 }
   0x9   : > { %s1065_s20 = scalar_select %p24_p0, %s966_s14, %s26_s19  }
   0xa   : > { %p1067_p4 = por %p34_p2, %p33_p1  ;;  %p40_p5 = scmp.eq.s32.totalorder %s1052_s16, 0 }
   0xb   : > { %p115_p6 = scmp.eq.s32.totalorder %s1052_s16, 1  ;;  %p653_p9 = scmp.ge.s32.totalorder %s970_s15, 2 }
   0xc   : > { %p1073_p7 = por %p40_p5, %p39_p3 }
   0xd   : > { %p1077_p8 = por %p115_p6, %p33_p1  ;;  %137 = sbr.rel (%p653_p9) target bundleno = 125 (0x7d), region = 16 }
   0xf   : > { %s1298_s23 = scalar_select %p1077_p8, 1, 0 }
  0x14   : > { %140 = sbr.rel (!%p1067_p4) target bundleno = 55 (0x37), region = 20  ;;  %s141_s24 = sand.u32 (%p1067_p4), 1, %s966_s14  }
  0x15   : > { %s655_s25 = sshll.u32 (%p1067_p4), %s970_s15, 1  ;;  %s654_s26 = sshll.u32 (%p1067_p4), %s141_s24, 4 }
  0x16   : > { %s147_s27 = ssub.s32 (%p1067_p4), 3, %s655_s25  ;;  %s1089_s30 = scalar_lea.sflag (%p1067_p4), [#allocation3], %s141_s24 }
  0x17   : > { %p148_p10 = scmp.lt.s32.totalorder (%p1067_p4), %s147_s27, 2  ;;  %s145_s4 = scalar_lea.vmem (%p1067_p4), [#allocation2], %s654_s26 }
  0x1b   : > { %s1305_s27 = smov (!%p148_p10, %s147_s27), 2 }
  0x1c   : > { %s1086_s28 = sshll.u32 %s1305_s27, 7 }
  0x1d   : > { %s152_s29 = ssub.s32 256, %s1086_s28 }
  0x1e   : > { %153 = vsyncadd %s1089_s30, %s152_s29  ;;  %p657_p11 = scmp.ne.s32.totalorder %s1086_s28, 0  ;;  %s697_s5 = sshll.u32 %s970_s15, 8 }
  0x1f   : > { %s1097_s8 = scalar_lea.hbm %s1292_s0, %s697_s5  ;;  %s158_s9 = sshll.u32 %s145_s4, 4  ;;  %s1099_s9 = int_to_ptr.vmem [resolvable:$true] %s158_s9 }
  0x20   : > { %s816_s10 = scalar_lea.hbm %s1097_s8, %s1086_s28  ;;  %s820_s18 = scalar_lea.hbm %s1292_s0, 384 }
  0x21   : > { %p817_p12 = scmp.ne.s32.totalorder %s1097_s8, %s816_s10  ;;  %p821_p1 = scmp.lt.u32.totalorder %s1097_s8, %s1292_s0 }
  0x22   : > { %p822_p2 = scmp.lt.u32.totalorder %s820_s18, %s816_s10  ;;  %p824_p5 = scmp.lt.u32.totalorder %s816_s10, %s1097_s8 }
  0x23   : > { %p818_p13 = pnand %p817_p12, %p657_p11 }
  0x24   : > { %p823_p3 = por %p822_p2, %p821_p1 }
  0x25   : > { %p819_p0 = pneg %p818_p13 }
  0x26   : > { %p825_p6 = por %p824_p5, %p823_p3 }
  0x28   : > { %p826_p9 = pnand %p825_p6, %p819_p0 }
  0x2a   : > { %829 = shalt.err (!%p826_p9)
}
  0x2b   : > { %s830_s25 = scalar_lea.vmem %s1099_s9, %s1086_s28  ;;  %s1004_s26 = smov [#allocation2]  }
  0x2c   : > { %p831_p10 = scmp.ne.s32.totalorder %s1099_s9, %s830_s25  ;;  %s834_s27 = sshll.u32 %s1004_s26, 4  ;;  %s835_s27 = int_to_ptr.vmem [resolvable:$false] %s834_s27 }
  0x2d   : > { %s836_s29 = scalar_lea.vmem %s835_s27, 512  ;;  %p837_p8 = scmp.lt.s32.totalorder %s1099_s9, %s835_s27 }
  0x2e   : > { %p832_p12 = pnand %p831_p10, %p657_p11  ;;  %p838_p1 = scmp.lt.s32.totalorder %s836_s29, %s830_s25 }
  0x30   : > { %p833_p13 = pneg %p832_p12  ;;  %p839_p2 = por %p838_p1, %p837_p8 }
  0x32   : > { %p840_p3 = pnand %p839_p2, %p833_p13 }
  0x34   : > { %843 = shalt.err (!%p840_p3)
}
  0x35   : > { %s1005_s4 = smov 128   ;;  %s1006_s5 = smov 8  }
  0x36   : > { %164 = dma.hbm_to_vmem [thread:$0]  (%p657_p11), %s1097_s8, %s1086_s28, %s1099_s9, %s1089_s30, %s1005_s4, %s1005_s4, %s1006_s5  }
  0x37 PF: > { %167 = sbr.rel (!%p1067_p4) target bundleno = 90 (0x5a), region = 24  ;;  %s168_s6 = sand.u32 (%p1067_p4), 1, %s970_s15  }
  0x38   : > { %s170_s7 = sand.u32 (%p1067_p4), 1, %s966_s14   ;;  %s662_s11 = sshll.u32 (%p1067_p4), %s970_s15, 1 }
  0x39   : > { %s661_s10 = sshll.u32 (%p1067_p4), %s170_s7, 4  ;;  %s174_s12 = ssub.s32 (%p1067_p4), 3, %s662_s11 }
  0x3a   : > { %p175_p8 = scmp.lt.s32.totalorder (%p1067_p4), %s174_s12, 2  ;;  %s1134_s24 = scalar_lea.sflag (%p1067_p4), [#allocation5], %s168_s6 }
  0x3b   : > { %s172_s28 = scalar_lea.vmem (%p1067_p4), [#allocation4], %s661_s10 }
  0x3e   : > { %s1307_s12 = smov (!%p175_p8, %s174_s12), 2 }
  0x3f   : > { %s1131_s18 = sshll.u32 %s1307_s12, 7 }
  0x40   : > { %s179_s19 = ssub.s32 256, %s1131_s18 }
  0x41   : > { %180 = vsyncadd %s1134_s24, %s179_s19  ;;  %p664_p11 = scmp.ne.s32.totalorder %s1131_s18, 0  ;;  %s698_s30 = sshll.u32 %s970_s15, 8 }
  0x42   : > { %s1142_s25 = scalar_lea.hbm %s1293_s1, %s698_s30  ;;  %s185_s26 = sshll.u32 %s172_s28, 4  ;;  %s1144_s26 = int_to_ptr.vmem [resolvable:$true] %s185_s26 }
  0x43   : > { %s844_s27 = scalar_lea.hbm %s1142_s25, %s1131_s18  ;;  %s848_s5 = scalar_lea.hbm %s1293_s1, 384 }
  0x44   : > { %p845_p0 = scmp.ne.s32.totalorder %s1142_s25, %s844_s27  ;;  %p849_p9 = scmp.lt.u32.totalorder %s1142_s25, %s1293_s1 }
  0x45   : > { %p850_p10 = scmp.lt.u32.totalorder %s848_s5, %s844_s27  ;;  %p852_p13 = scmp.lt.u32.totalorder %s844_s27, %s1142_s25 }
  0x46   : > { %p846_p5 = pnand %p845_p0, %p664_p11 }
  0x47   : > { %p851_p12 = por %p850_p10, %p849_p9 }
  0x48   : > { %p847_p6 = pneg %p846_p5 }
  0x49   : > { %p853_p1 = por %p852_p13, %p851_p12 }
  0x4b   : > { %p854_p2 = pnand %p853_p1, %p847_p6 }
  0x4d   : > { %857 = shalt.err (!%p854_p2)
}
  0x4e   : > { %s858_s10 = scalar_lea.vmem %s1144_s26, %s1131_s18  ;;  %s1007_s11 = smov [#allocation4]  }
  0x4f   : > { %p859_p3 = scmp.ne.s32.totalorder %s1144_s26, %s858_s10  ;;  %s862_s12 = sshll.u32 %s1007_s11, 4  ;;  %s863_s12 = int_to_ptr.vmem [resolvable:$false] %s862_s12 }
  0x50   : > { %s864_s19 = scalar_lea.vmem %s863_s12, 512  ;;  %p865_p5 = scmp.lt.s32.totalorder %s1144_s26, %s863_s12 }
  0x51   : > { %p860_p8 = pnand %p859_p3, %p664_p11  ;;  %p866_p9 = scmp.lt.s32.totalorder %s864_s19, %s858_s10 }
  0x53   : > { %p861_p0 = pneg %p860_p8  ;;  %p867_p10 = por %p866_p9, %p865_p5 }
  0x55   : > { %p868_p12 = pnand %p867_p10, %p861_p0 }
  0x57   : > { %871 = shalt.err (!%p868_p12)
}
  0x58   : > { %s1008_s28 = smov 128   ;;  %s1009_s30 = smov 8  }
  0x59   : > { %191 = dma.hbm_to_vmem [thread:$0]  (%p664_p11), %s1142_s25, %s1131_s18, %s1144_s26, %s1134_s24, %s1008_s28, %s1008_s28, %s1009_s30  }
  0x5a PF: > { %194 = sbr.rel (!%p1067_p4) target bundleno = 125 (0x7d), region = 28  ;;  %s195_s8 = sand.u32 (%p1067_p4), 1, %s970_s15  }
  0x5b   : > { %s197_s9 = sand.u32 (%p1067_p4), 1, %s966_s14   ;;  %s669_s29 = sshll.u32 (%p1067_p4), %s970_s15, 1 }
  0x5c   : > { %s668_s27 = sshll.u32 (%p1067_p4), %s197_s9, 4  ;;  %s201_s4 = ssub.s32 (%p1067_p4), 3, %s669_s29 }
  0x5d   : > { %p202_p6 = scmp.lt.s32.totalorder (%p1067_p4), %s201_s4, 2  ;;  %s1179_s7 = scalar_lea.sflag (%p1067_p4), [#allocation5], %s195_s8 }
  0x5e   : > { %s199_s18 = scalar_lea.vmem (%p1067_p4), [#allocation6], %s668_s27 }
  0x61   : > { %s1309_s4 = smov (!%p202_p6, %s201_s4), 2 }
  0x62   : > { %s1176_s5 = sshll.u32 %s1309_s4, 7 }
  0x63   : > { %s206_s6 = ssub.s32 256, %s1176_s5 }
  0x64   : > { %207 = vsyncadd %s1179_s7, %s206_s6  ;;  %p671_p4 = scmp.ne.s32.totalorder %s1176_s5, 0  ;;  %s699_s21 = sshll.u32 %s970_s15, 8 }
  0x65   : > { %s1187_s26 = scalar_lea.hbm %s1294_s2, %s699_s21  ;;  %s212_s10 = sshll.u32 %s199_s18, 4  ;;  %s1189_s10 = int_to_ptr.vmem [resolvable:$true] %s212_s10 }
  0x66   : > { %s872_s11 = scalar_lea.hbm %s1187_s26, %s1176_s5  ;;  %s876_s28 = scalar_lea.hbm %s1294_s2, 384 }
  0x67   : > { %p873_p11 = scmp.ne.s32.totalorder %s1187_s26, %s872_s11  ;;  %p877_p2 = scmp.lt.u32.totalorder %s1187_s26, %s1294_s2 }
  0x68   : > { %p878_p3 = scmp.lt.u32.totalorder %s876_s28, %s872_s11  ;;  %p880_p0 = scmp.lt.u32.totalorder %s872_s11, %s1187_s26 }
  0x69   : > { %p874_p13 = pnand %p873_p11, %p671_p4 }
  0x6a   : > { %p879_p8 = por %p878_p3, %p877_p2 }
  0x6b   : > { %p875_p1 = pneg %p874_p13 }
  0x6c   : > { %p881_p5 = por %p880_p0, %p879_p8 }
  0x6e   : > { %p882_p9 = pnand %p881_p5, %p875_p1 }
  0x70   : > { %885 = shalt.err (!%p882_p9)
}
  0x71   : > { %s886_s9 = scalar_lea.vmem %s1189_s10, %s1176_s5  ;;  %s1010_s27 = smov [#allocation6]  }
  0x72   : > { %p887_p10 = scmp.ne.s32.totalorder %s1189_s10, %s886_s9  ;;  %s890_s29 = sshll.u32 %s1010_s27, 4  ;;  %s891_s29 = int_to_ptr.vmem [resolvable:$false] %s890_s29 }
  0x73   : > { %s892_s4 = scalar_lea.vmem %s891_s29, 512  ;;  %p893_p11 = scmp.lt.s32.totalorder %s1189_s10, %s891_s29 }
  0x74   : > { %p888_p12 = pnand %p887_p10, %p671_p4  ;;  %p894_p13 = scmp.lt.s32.totalorder %s892_s4, %s886_s9 }
  0x76   : > { %p889_p6 = pneg %p888_p12  ;;  %p895_p2 = por %p894_p13, %p893_p11 }
  0x78   : > { %p896_p3 = pnand %p895_p2, %p889_p6 }
  0x7a   : > { %899 = shalt.err (!%p896_p3)
}
  0x7b   : > { %s1011_s6 = smov 128   ;;  %s1012_s18 = smov 8  }
  0x7c   : > { %218 = dma.hbm_to_vmem [thread:$0]  (%p671_p4), %s1187_s26, %s1176_s5, %s1189_s10, %s1179_s7, %s1011_s6, %s1011_s6, %s1012_s18  }
  0x7d PF: > { %p675_p1 = scmp.ge.s32.totalorder %s970_s15, 1  ;;  %p220_p8 = scmp.lt.s32.totalorder %s970_s15, 3 }
  0x7f   : > { %p221_p0 = pnand %p675_p1, %p220_p8 }
  0x80   : > { %s226_s21 = sand.u32 (!%p221_p0), 1, %s962_s13  }
  0x81   : > { %224 = sbr.rel (%p221_p0) target bundleno = 367 (0x16f), region = 32  ;;  %s1219_s24 = sshll.u32 (!%p221_p0), %s226_s21, 4 }
  0x82   : > { %s227_s25 = scalar_lea.sflag (!%p221_p0), [#allocation3], %s226_s21  ;;  %s230_s11 = scalar_lea.vmem (!%p221_p0), [#allocation2], %s1219_s24 }
  0x88   : > { %949 = dma.done.wait (%p1073_p7), %s227_s25, 256  }
  0x89   : > { %951 = vsyncadd (%p1073_p7), %s227_s25, 4294967040  ;;  %s235_s5 = sand.u32 1, %s1052_s16   ;;  %s239_s7 = scalar_lea.vmem [#allocation4], %s1219_s24 }
  0x8a   : > { %s236_s15 = scalar_lea.sflag [#allocation5], %s235_s5 }
  0x8b   : > { %953 = dma.done.wait (%p1073_p7), %s236_s15, 512  }
  0x8c   : > { %955 = vsyncadd (%p1073_p7), %s236_s15, 4294966784  ;;  %s248_s26 = scalar_lea.vmem [#allocation6], %s1219_s24  ;;  %vm308_vm0 = vcmask 261120   ;;  %v300_v1 = vld [vmem:[%s230_s11] sm:$0xff]  ;;  %v301_v6 = vld [vmem:[%s230_s11 + $0x8] sm:$0xff]  ;;  %vm375_vm1 = vcmask 7168  }
  0x8d   : > { %v304_v0 = vld [vmem:[%s248_s26] sm:$0xff]  ;;  %v305_v2 = vld [vmem:[%s248_s26 + $0x8] sm:$0xff]  ;;  %v306_v4 = vmul.f32 %v300_v1, %v300_v1  ;;  %v307_v7 = vmul.f32 %v301_v6, %v301_v6  ;;  %s1244_s22 = scalar_lea.vmem [#allocation7], %s1219_s24   ;;  %p1299_p7 = scmp.ne.s32.totalorder %s1298_s23, 0 }
  0x8e   : > { %v351_v3 = vmul.f32 %v304_v0, %v304_v0  ;;  %v352_v5 = vmul.f32 %v305_v2, %v305_v2  ;;  %v303_v8 = vld [vmem:[%s239_s7 + $0x8] sm:$0xff]  ;;  %v302_v9 = vld [vmem:[%s239_s7] sm:$0xff]  ;;  %v343_v18 = vmul.f32 %v304_v0, %v300_v1  ;;  %v344_v19 = vmul.f32 %v305_v2, %v301_v6  ;;  %s681_s10 = sshll.u32 (%p1299_p7), %s1052_s16, 1  ;;  %s700_s12 = sshll.u32 (%p1299_p7), %s1052_s16, 4 }
  0x8f   : > { %v309_v11 = vsel %vm308_vm0, %v306_v4, 0.0  ;;  %v312_v13 = vsel %vm308_vm0, %v307_v7, 0.0  ;;  %v326_v14 = vmul.f32 %v303_v8, %v303_v8  ;;  %v325_v15 = vmul.f32 %v302_v9, %v302_v9  ;;  %s386_s19 = ssub.s32 (%p1299_p7), 3, %s681_s10  ;;  %s1255_s8 = scalar_lea.vmem (%p1299_p7), %s1295_s3, %s700_s12  }
  0x90   : > { %v353_v10 = vsel %vm308_vm0, %v351_v3, 0.0  ;;  %310 = vadd.xlane.f32.xlu0 %v309_v11  ;;  %v356_v12 = vsel %vm308_vm0, %v352_v5, 0.0  ;;  %v345_v20 = vsel %vm308_vm0, %v343_v18, 0.0  ;;  %v348_v21 = vsel %vm308_vm0, %v344_v19, 0.0  ;;  %p387_p4 = scmp.lt.s32.totalorder (%p1299_p7), %s386_s19, 2 }
  0x91   : > { %354 = vadd.xlane.f32.xlu1 %v353_v10  ;;  %v330_v16 = vsel %vm308_vm0, %v326_v14, 0.0  ;;  %v327_v17 = vsel %vm308_vm0, %v325_v15, 0.0  ;;  %v318_v22 = vmul.f32 %v303_v8, %v301_v6  ;;  %v317_v23 = vmul.f32 %v302_v9, %v300_v1 }
  0x93   : > { %v322_v24 = vsel %vm308_vm0, %v318_v22, 0.0  ;;  %v319_v25 = vsel %vm308_vm0, %v317_v23, 0.0 }
  0x94   : > { %313 = vadd.xlane.f32.xlu0 %v312_v13 }
  0x95   : > { %357 = vadd.xlane.f32.xlu1 %v356_v12 }
  0x98   : > { %328 = vadd.xlane.f32.xlu0 %v327_v17 }
  0x99   : > { %331 = vadd.xlane.f32.xlu1 %v330_v16 }
  0x9c   : > { %346 = vadd.xlane.f32.xlu0 %v345_v20 }
  0x9d   : > { %349 = vadd.xlane.f32.xlu1 %v348_v21 }
  0xa0   : > { %320 = vadd.xlane.f32.xlu0 %v319_v25 }
  0xa1   : > { %323 = vadd.xlane.f32.xlu1 %v322_v24 }
 0x11d   : > { %v311_v27 = vpop.xlane.xlu0 %310 }
 0x11e   : > { %v355_v26 = vpop.xlane.xlu1 %354  ;;  %v315_v29 = vmax.f32 %v311_v27, 1e-16 }
 0x11f   : > { %v359_v28 = vmax.f32 %v355_v26, 1e-16 }
 0x121   : > { %v363_v30 = vmul.f32 %v359_v28, %v315_v29  ;;  %v314_v32 = vpop.xlane.xlu0 %313 }
 0x122   : > { %v358_v31 = vpop.xlane.xlu1 %357  ;;  %v316_v34 = vmax.f32 %v314_v32, 1e-16 }
 0x123   : > { %v360_v33 = vmax.f32 %v358_v31, 1e-16  ;;  %808 = vrcp.f32 %v363_v30 }
 0x125   : > { %v364_v35 = vmul.f32 %v360_v33, %v316_v34  ;;  %v329_v37 = vpop.xlane.xlu0 %328 }
 0x126   : > { %v332_v36 = vpop.xlane.xlu1 %331  ;;  %v333_v39 = vmax.f32 %v329_v37, 1e-16 }
 0x127   : > { %810 = vrcp.f32 %v364_v35  ;;  %v334_v38 = vmax.f32 %v332_v36, 1e-16 }
 0x128   : > { %v337_v41 = vmul.f32 %v333_v39, %v315_v29 }
 0x129   : > { %v338_v40 = vmul.f32 %v334_v38, %v316_v34  ;;  %v347_v43 = vpop.xlane.xlu0 %346 }
 0x12a   : > { %v350_v42 = vpop.xlane.xlu1 %349  ;;  %v361_v45 = vmul.f32 %v347_v43, %v347_v43 }
 0x12b   : > { %812 = vrcp.f32 %v338_v40  ;;  %v362_v44 = vmul.f32 %v350_v42, %v350_v42 }
 0x12c   : > { %814 = vrcp.f32 %v337_v41 }
 0x12d   : > { %v809_v47 = vpop.eup %808  ;;  %v321_v48 = vpop.xlane.xlu0 %320 }
 0x12e   : > { %v324_v46 = vpop.xlane.xlu1 %323  ;;  %v367_v52 = vmul.f32 %v809_v47, %v361_v45  ;;  %v335_v53 = vmul.f32 %v321_v48, %v321_v48 }
 0x12f   : > { %v336_v51 = vmul.f32 %v324_v46, %v324_v46 }
 0x130   : > { %v369_v58 = vsub.f32 1.0, %v367_v52 }
 0x131   : > { %v811_v49 = vpop.eup %810 }
 0x132   : > { %v368_v50 = vmul.f32 %v811_v49, %v362_v44 }
 0x134   : > { %v370_v56 = vsub.f32 1.0, %v368_v50 }
 0x135   : > { %v813_v54 = vpop.eup %812 }
 0x136   : > { %v815_v55 = vpop.eup %814  ;;  %v342_v57 = vmul.f32 %v813_v54, %v336_v51 }
 0x137   : > { %v341_v59 = vmul.f32 %v815_v55, %v335_v53  ;;  %384 = sbr.rel (!%p1299_p7) target bundleno = 367 (0x16f), region = 48 }
 0x138   : > { %v372_v60 = vadd.f32 %v370_v56, %v342_v57 }
 0x139   : > { %v371_v61 = vadd.f32 %v369_v58, %v341_v59 }
 0x13a   : > { %v374_v62 = vmul.f32 0.5, %v372_v60 }
 0x13b   : > { %v373_v63 = vmul.f32 0.5, %v371_v61 }
 0x13c   : > { %377 = vst.msk [vmem:[%s1244_s22 + $0x8] sm:$0xff] %vm375_vm1, %v374_v62 }
 0x13d   : > { %376 = vst.msk [vmem:[%s1244_s22] sm:$0xff] %vm375_vm1, %v373_v63 }
 0x13e   : > { %s1311_s19 = smov (!%p387_p4, %s386_s19), 2 }
 0x13f   : > { %s682_s9 = sshll.u32 %s1311_s19, 7 }
 0x140   : > { %p685_p5 = scmp.eq.s32.totalorder %s682_s9, 0 }
 0x141   : > { %s1261_s23 = sshrl.u32 (!%p685_p5), %s1311_s19, 1 }
 0x142   : > { %395 = sbr.rel (%p685_p5) target bundleno = 367 (0x16f), region = 52  ;;  %p686_p9 = scmp.le.s32.totalorder (!%p685_p5), %s1261_s23, 0 }
 0x149   : > { %586 = sbr.rel (%p686_p9) target bundleno = 346 (0x15a), region = 150  ;;  %s972_s16 = smov (!%p686_p9), %s1255_s8  }
 0x14a   : > { %s976_s27 = smov (!%p686_p9), %s1244_s22   ;;  %s980_s29 = smov (!%p686_p9), 0  }
 0x14b   : > { %s984_s4 = smov (!%p686_p9), 0  }
 0x150 LB: >> { %v459_v0 = vld [vmem:[%s978_s27] sm:$0xff]  ;;  %v461_v1 = vld [vmem:[%s978_s27 + $0x8] sm:$0xff]  ;;  %s463_s6 = sadd.s32 1, %s982_s29  ;;  %s453_s4 = sadd.s32 1, %s986_s4   ;;  %s986_s4 = sphi %s984_s4, %s453_s4   ;;  %s982_s29 = sphi %s980_s29, %s981_s29   ;;  %s978_s27 = sphi %s976_s27, %s468_s27   ;;  %s974_s16 = sphi %s972_s16, %s469_s16  }
 0x151   : >> { %460 = vst [vmem:[%s974_s16] sm:$0xff] %v459_v0  ;;  %462 = vst [vmem:[%s974_s16 + $0x8] sm:$0xff] %v461_v1  ;;  %p464_p10 = scmp.ge.s32.totalorder %s463_s6, %s1261_s23  ;;  %p452_p12 = scmp.ge.s32.totalorder %s453_s4, %s1261_s23 }
 0x153   : >> { %s1313_s6 = smov (%p464_p10, %s463_s6), 0  ;;  %455 = sbr.rel (!%p452_p12) target bundleno = 336 (0x150), region = 156 }
 0x154   : >> { %s687_s18 = sshll.u32 %s1313_s6, 4  ;;  %s981_s29 = smov %s1313_s6  }
 0x155   : >> { %s468_s27 = scalar_lea.vmem %s1244_s22, %s687_s18 [#allocation7]   ;;  %s469_s16 = scalar_lea.vmem %s1255_s8, %s687_s18  }
 0x15a PF: > { %s1271_s21 = sand.u32 1, %s1311_s19   ;;  %s701_s24 = sshll.u32 %s1261_s23, 4 }
 0x15b   : > { %s474_s25 = scalar_lea.vmem %s1244_s22, %s701_s24 [#allocation7]   ;;  %s476_s11 = scalar_lea.vmem %s1255_s8, %s701_s24  }
 0x15c   : > { %p692_p6 = scmp.le.s32.totalorder %s1271_s21, 0 }
 0x15d   : > { %s988_s5 = smov (!%p692_p6), %s476_s11   ;;  %s992_s15 = smov (!%p692_p6), %s474_s25  }
 0x15e   : > { %600 = sbr.rel (%p692_p6) target bundleno = 367 (0x16f), region = 161  ;;  %s996_s7 = smov (!%p692_p6), 0  }
 0x15f   : > { %s1000_s26 = smov (!%p692_p6), 0  }
 0x165 LB: >> { %v486_v2 = vld [vmem:[%s994_s15] sm:$0xff]  ;;  %s488_s10 = sadd.s32 1, %s998_s7  ;;  %s480_s26 = sadd.s32 1, %s1002_s26   ;;  %s1002_s26 = sphi %s1000_s26, %s480_s26   ;;  %s998_s7 = sphi %s996_s7, %s997_s7   ;;  %s994_s15 = sphi %s992_s15, %s493_s15   ;;  %s990_s5 = sphi %s988_s5, %s494_s5  }
 0x166   : >> { %487 = vst [vmem:[%s990_s5] sm:$0xff] %v486_v2  ;;  %p489_p11 = scmp.ge.s32.totalorder %s488_s10, %s1271_s21  ;;  %p479_p13 = scmp.ge.s32.totalorder %s480_s26, %s1271_s21 }
 0x168   : >> { %s1315_s10 = smov (%p489_p11, %s488_s10), 0  ;;  %482 = sbr.rel (!%p479_p13) target bundleno = 357 (0x165), region = 167 }
 0x169   : >> { %s693_s22 = sshll.u32 %s1315_s10, 3  ;;  %s997_s7 = smov %s1315_s10  }
 0x16a   : >> { %s493_s15 = scalar_lea.vmem %s474_s25, %s693_s22 [#allocation7]   ;;  %s494_s5 = scalar_lea.vmem %s476_s11, %s693_s22  }
 0x16f PF: > { %p16_p2 = scmp.ge.s32.totalorder %s1055_s17, 4   ;;  %s1300_s12 = smov %s962_s13 }
 0x170   : > { %s1301_s13 = smov %s966_s14  ;;  %s1302_s14 = smov %s1065_s20 }
 0x171   : > { %s1303_s15 = smov %s1055_s17  ;;  %18 = sbr.rel (!%p16_p2) target bundleno = 5 (0x5), region = 178 }
 0x178   :  { %510 = vsyncpa [#allocation3], 1 }
 0x179   :  { %512 = vsyncpa [#allocation3 + $0x1], 1 }
 0x17a   :  { %513 = vsyncpa [#allocation5], 1 }
 0x17b   :  { %515 = vsyncpa [#allocation5 + $0x1], 1 }

</bundles_post_ra>
